<compile_context>
chip_gen: v5e
topology: v5e:2x2
jax: 0.10.0
libtpu: 0.0.40
codegen_flags: <defaults>
</compile_context>

<pallas_src>
import jax
import jax.numpy as jnp
from jax import lax
from jax.experimental import pallas as pl
from jax.experimental.pallas import tpu as pltpu


# ------------------------------ fused forward --------------------------------

def audio_resnet_forward(x, p):
    f32 = jnp.float32
    B, Cin, L = x.shape
    K0, S0 = p["stem"]["k"], p["stem"]["s"]
    P = 2 * S0
    assert L % P == 0 and K0 <= P, "need L % (2*stride) == 0 and kernel <= 2*stride"
    ME = L // P                                 # even-phase length == length after block 1
    assert (L - K0) // S0 + 1 == 2 * ME - 1, "stem output length must be odd"
    POOL = p["pool"]
    assert ME % POOL == 0, "adaptive pool implemented for uniform windows"
    WIN = ME // POOL
    assert WIN & (WIN - 1) == 0, "pool window must be a power of two"
    C1 = p["stem"]["w"].shape[0]
    C2 = p["block1"]["w1"].shape[0]
    O = p["bl"].shape[0]
    KIN = Cin * K0
    BM = B * ME                                 # lane extent: lane = position*B + batch

    # ---------------- host-side layout plumbing (no compute hoisted) ----------
    # Polyphase im2col of the input: the strided stem conv becomes one dense
    # matmul per phase.  Row = cin*K0 + tap, lane = position*B + batch.
    xpad = jnp.pad(x.astype(f32), ((0, 0), (0, 0), (0, P)))

    def phase(start):
        w = xpad[:, :, start:start + ME * P].reshape(B, Cin, ME, P)[..., :K0]
        return jnp.transpose(w, (1, 3, 2, 0)).reshape(KIN, BM)

    xin = jnp.concatenate([phase(0), phase(S0)], axis=0)        # (2*KIN, BM)

    def fold(w, bn):                            # fold BN scale into conv weight
        return w * bn[0][:, None, None], bn[1]

    def flat3(w):                               # (Cout,Cin,3) -> (Cout,3*Cin), col = tap*Cin+cin
        return jnp.transpose(w, (0, 2, 1)).reshape(w.shape[0], -1)

    b1, b2 = p["block1"], p["block2"]
    w0, bi0 = fold(p["stem"]["w"], p["stem"]["bn"])
    w1a, bi1a = fold(b1["w1"], b1["bn1"])
    w1b, bi1b = fold(b1["w2"], b1["bn2"])
    wsc, bisc = fold(b1["ws"], b1["bns"])
    w2a, bi2a = fold(b2["w1"], b2["bn1"])
    w2b, bi2b = fold(b2["w2"], b2["bn2"])
    # classifier weight reordered to column = pool_window*C2 + channel so the
    # in-kernel pooled features need no transpose before the single matmul.
    wlin = jnp.transpose(p["wl"].reshape(O, C2, POOL), (0, 2, 1)).reshape(O, POOL * C2)

    mats = [w0.reshape(C1, KIN), flat3(w1a), flat3(w1b), wsc[:, :, 0],
            flat3(w2a), flat3(w2b), wlin]
    bias = [bi0, bi1a, bi1b, bisc, bi2a, bi2b, p["bl"]]
    wcols = max(m.shape[1] for m in mats)
    offs, off = [], 0
    for m in mats:
        offs.append(off)
        off += m.shape[0]                       # 8,16,16,16,16,16,10 -> 8-aligned starts
    wpack = jnp.concatenate(
        [jnp.pad(m, ((0, 0), (0, wcols - m.shape[1]))) for m in mats], axis=0)
    bpack = jnp.concatenate([b.reshape(-1, 1) for b in bias], axis=0)
    o0, o1a, o1b, osc, o2a, o2b, ol = offs

    # --------------------------------- kernel ---------------------------------
    def kernel(xin_ref, w_ref, b_ref, o_ref):
        def wb(r0, rows, cols):                 # sublane-aligned slab slices
            return w_ref[r0:r0 + rows, 0:cols], b_ref[r0:r0 + rows, :]

        def prev_pos(v):                        # value at position m-1 (zero at m == 0)
            return jnp.concatenate(
                [jnp.zeros((v.shape[0], B), f32), v[:, :BM - B]], axis=1)

        def next_pos(v):                        # value at position m+1 (zero at m == ME-1)
            return jnp.concatenate(
                [v[:, B:], jnp.zeros((v.shape[0], B), f32)], axis=1)

        def conv3(v, r0, cin):                  # k=3/stride1/pad1 as ONE 3*cin-deep matmul
            w, b_ = wb(r0, C2, 3 * cin)
            im = jnp.concatenate([prev_pos(v), v, next_pos(v)], axis=0)
            return jnp.dot(w, im, preferred_element_type=f32) + b_

        # ---- stem: Conv1d(Cin->C1, k=K0, stride=S0) + BN bias + ReLU ---------
        w0_, b0_ = wb(o0, C1, KIN)
        a_e = jnp.maximum(
            jnp.dot(w0_, xin_ref[0:KIN, :], preferred_element_type=f32) + b0_, 0.0)
        a_o = jnp.maximum(
            jnp.dot(w0_, xin_ref[KIN:2 * KIN, :], preferred_element_type=f32) + b0_, 0.0)
        # stem output has odd length: the last odd-phase position is the zero
        # pad seen by block 1, so clear it.
        a_o = jnp.concatenate([a_o[:, :BM - B], jnp.zeros((C1, B), f32)], axis=1)

        # ---- block 1: C1 -> C2, stride 2, conv1x1 shortcut --------------------
        # conv1 taps at output i: a1[2i-1]=odd[i-1], a1[2i]=even[i], a1[2i+1]=odd[i]
        w1a_, b1a_ = wb(o1a, C2, 3 * C1)
        im1 = jnp.concatenate([prev_pos(a_o), a_e, a_o], axis=0)
        u = jnp.maximum(jnp.dot(w1a_, im1, preferred_element_type=f32) + b1a_, 0.0)
        ws_, bs_ = wb(osc, C2, C1)
        sc = jnp.dot(ws_, a_e, preferred_element_type=f32) + bs_
        h = jnp.maximum(conv3(u, o1b, C2) + sc, 0.0)

        # ---- block 2: C2 -> C2, stride 1, identity shortcut -------------------
        u2 = jnp.maximum(conv3(h, o2a, C2), 0.0)
        h2 = jnp.maximum(conv3(u2, o2b, C2) + h, 0.0)

        # ---- AdaptiveMaxPool1d(POOL) + Linear + log_softmax -------------------
        # shifted-max tree: lane (m*B+b) ends up with max over positions
        # m..m+WIN-1; window-start lanes (m = w*WIN) hold the pooled values.
        t = h2
        s = B
        while s < WIN * B:
            t = jnp.maximum(
                t, jnp.concatenate(
                    [t[:, s:], jnp.full((C2, s), -jnp.inf, f32)], axis=1))
            s *= 2
        pooled = jnp.concatenate(
            [t[:, w * WIN * B:w * WIN * B + B] for w in range(POOL)],
            axis=0)                                                  # (POOL*C2, B)
        wl_, bl_ = wb(ol, O, POOL * C2)
        logits = jnp.dot(wl_, pooled, preferred_element_type=f32) + bl_  # (O, B)
        zc = logits - jnp.max(logits, axis=0, keepdims=True)
        lse = jnp.log(jnp.sum(jnp.exp(zc), axis=0, keepdims=True))
        o_ref[...] = (zc - lse).astype(o_ref.dtype)

    vmem = pl.BlockSpec(memory_space=pltpu.MemorySpace.VMEM)
    out = pl.pallas_call(
        kernel,
        out_shape=jax.ShapeDtypeStruct((O, B), f32),
        in_specs=[vmem, vmem, vmem],
        out_specs=vmem,
    )(xin, wpack, bpack)
    return out.T                                                     # (B, O)


# -------------------------- parameter construction ---------------------------

def init_params(key, input_channels, output_size, *, first_hidden=8, hidden=16,
                stem_kernel=8, stem_stride=4, pool=4):
    eps = 1e-5
    keys = jax.random.split(key, 16)

    def conv_w(k, c_out, c_in, ksz):
        return jax.random.normal(k, (c_out, c_in, ksz), jnp.float32) / jnp.sqrt(c_in * ksz)

    def bn_fold(k, c):
        k1, k2, k3, k4 = jax.random.split(k, 4)
        gamma = 1.0 + 0.1 * jax.random.normal(k1, (c,), jnp.float32)
        beta = 0.1 * jax.random.normal(k2, (c,), jnp.float32)
        mean = 0.1 * jax.random.normal(k3, (c,), jnp.float32)
        var = jax.random.uniform(k4, (c,), jnp.float32, minval=0.5, maxval=1.5)
        scale = gamma / jnp.sqrt(var + eps)
        return jnp.stack([scale, beta - mean * scale], axis=0)   # (2, c)

    stem = {"w": conv_w(keys[0], first_hidden, input_channels, stem_kernel),
            "bn": bn_fold(keys[1], first_hidden), "k": stem_kernel, "s": stem_stride}
    block1 = {"w1": conv_w(keys[2], hidden, first_hidden, 3), "bn1": bn_fold(keys[3], hidden),
              "w2": conv_w(keys[4], hidden, hidden, 3), "bn2": bn_fold(keys[5], hidden),
              "ws": conv_w(keys[6], hidden, first_hidden, 1), "bns": bn_fold(keys[7], hidden),
              "stride": 2}
    block2 = {"w1": conv_w(keys[8], hidden, hidden, 3), "bn1": bn_fold(keys[9], hidden),
              "w2": conv_w(keys[10], hidden, hidden, 3), "bn2": bn_fold(keys[11], hidden),
              "stride": 1}
    in_feat = hidden * pool
    wl = jax.random.normal(keys[12], (output_size, in_feat), jnp.float32) / jnp.sqrt(in_feat)
    bl = 0.1 * jax.random.normal(keys[13], (output_size,), jnp.float32)
    return {"stem": stem, "block1": block1, "block2": block2,
            "pool": pool, "wl": wl, "bl": bl}


# ------------------------------ pure-JAX reference ---------------------------

def reference_forward(x, p):
    def conv(y, w, stride, pad):
        return lax.conv_general_dilated(y, w, (stride,), [(pad, pad)],
                                        dimension_numbers=("NCH", "OIH", "NCH"))

    def bn(y, b):
        return y * b[0].reshape(1, -1, 1) + b[1].reshape(1, -1, 1)

    y = x.astype(jnp.float32)
    y = jnp.maximum(bn(conv(y, p["stem"]["w"], p["stem"]["s"], 0), p["stem"]["bn"]), 0.0)
    for blk in (p["block1"], p["block2"]):
        m = jnp.maximum(bn(conv(y, blk["w1"], blk["stride"], 1), blk["bn1"]), 0.0)
        m = bn(conv(m, blk["w2"], 1, 1), blk["bn2"])
        s = bn(conv(y, blk["ws"], blk["stride"], 0), blk["bns"]) if "ws" in blk else y
        y = jnp.maximum(m + s, 0.0)
    B, C, L = y.shape
    pool = p["pool"]
    feat = y.reshape(B, C, pool, L // pool).max(axis=-1)
    logits = feat.reshape(B, -1) @ p["wl"].T + p["bl"]
    return jax.nn.log_softmax(logits, axis=-1)


# ----------------------------------- main ------------------------------------

if __name__ == "__main__":
    key = jax.random.PRNGKey(0)
    kp, kx = jax.random.split(key)

    input_channels, output_size = 2, 10
    batch, length = 2, 256
    # AudioResNet(input_channels, output_size,
    #             layers_args=[(8, 8, 4), (8, 16, 2), (16, 16, 1), (16, 4)])
    params = init_params(kp, input_channels, output_size,
                         first_hidden=8, hidden=16, stem_kernel=8, stem_stride=4, pool=4)
    x = jax.random.normal(kx, (batch, input_channels, length), jnp.float32)

    fwd = jax.jit(lambda inp: audio_resnet_forward(inp, params))
    out = jax.block_until_ready(fwd(x))
    ref = reference_forward(x, params)

    assert out.shape == (batch, output_size)
    max_err = float(jnp.max(jnp.abs(out - ref)))
    assert jnp.allclose(out, ref, rtol=1e-3, atol=1e-3), f"max abs err {max_err}"

    print("KERNEL_OK")
</pallas_src>

<mosaic_0001>
module attributes {stable_mosaic.version = 11 : i64} {
  func.func @kernel(%arg0: memref<32x64xf32, #tpu.memory_space<vmem>>, %arg1: memref<98x64xf32, #tpu.memory_space<vmem>>, %arg2: memref<98x1xf32, #tpu.memory_space<vmem>>, %arg3: memref<10x2xf32, #tpu.memory_space<vmem>>) attributes {dimension_semantics = [], scalar_prefetch = 0 : i64, scratch_operands = 0 : i64, tpu.core_type = #tpu.core_type<tc>} {
    %c0 = arith.constant 0 : index
    %c0_0 = arith.constant 0 : index
    %0 = vector.load %arg1[%c0, %c0_0] : memref<98x64xf32, #tpu.memory_space<vmem>>, vector<8x16xf32>
    %c0_1 = arith.constant 0 : index
    %c0_2 = arith.constant 0 : index
    %1 = vector.load %arg2[%c0_1, %c0_2] : memref<98x1xf32, #tpu.memory_space<vmem>>, vector<8x1xf32>
    %c0_3 = arith.constant 0 : index
    %c0_4 = arith.constant 0 : index
    %2 = vector.load %arg0[%c0_3, %c0_4] : memref<32x64xf32, #tpu.memory_space<vmem>>, vector<16x64xf32>
    %cst = arith.constant dense<0.000000e+00> : vector<8x64xf32>
    %3 = tpu.matmul %0, %2, %cst {dimension_numbers = #tpu.dot_dimension_numbers<[1], [0], [0], [1], [0, 0, 1, 1], [], []>} : vector<8x16xf32>, vector<16x64xf32>, vector<8x64xf32> -> vector<8x64xf32>
    %4 = vector.broadcast %1 : vector<8x1xf32> to vector<8x64xf32>
    %5 = arith.addf %3, %4 : vector<8x64xf32>
    %cst_5 = arith.constant 0.000000e+00 : f32
    %6 = vector.broadcast %cst_5 : f32 to vector<8x64xf32>
    %7 = arith.maximumf %5, %6 : vector<8x64xf32>
    %c16 = arith.constant 16 : index
    %c0_6 = arith.constant 0 : index
    %8 = vector.load %arg0[%c16, %c0_6] : memref<32x64xf32, #tpu.memory_space<vmem>>, vector<16x64xf32>
    %cst_7 = arith.constant dense<0.000000e+00> : vector<8x64xf32>
    %9 = tpu.matmul %0, %8, %cst_7 {dimension_numbers = #tpu.dot_dimension_numbers<[1], [0], [0], [1], [0, 0, 1, 1], [], []>} : vector<8x16xf32>, vector<16x64xf32>, vector<8x64xf32> -> vector<8x64xf32>
    %10 = vector.broadcast %1 : vector<8x1xf32> to vector<8x64xf32>
    %11 = arith.addf %9, %10 : vector<8x64xf32>
    %cst_8 = arith.constant 0.000000e+00 : f32
    %12 = vector.broadcast %cst_8 : f32 to vector<8x64xf32>
    %13 = arith.maximumf %11, %12 : vector<8x64xf32>
    %14 = vector.extract_strided_slice %13 {offsets = [0, 0], sizes = [8, 62], strides = [1, 1]} : vector<8x64xf32> to vector<8x62xf32>
    %cst_9 = arith.constant 0.000000e+00 : f32
    %15 = vector.broadcast %cst_9 : f32 to vector<8x2xf32>
    %16 = tpu.concatenate %14, %15 in 1 : vector<8x62xf32>, vector<8x2xf32> -> vector<8x64xf32>
    %c8 = arith.constant 8 : index
    %c0_10 = arith.constant 0 : index
    %17 = vector.load %arg1[%c8, %c0_10] : memref<98x64xf32, #tpu.memory_space<vmem>>, vector<16x24xf32>
    %c8_11 = arith.constant 8 : index
    %c0_12 = arith.constant 0 : index
    %18 = vector.load %arg2[%c8_11, %c0_12] : memref<98x1xf32, #tpu.memory_space<vmem>>, vector<16x1xf32>
    %cst_13 = arith.constant 0.000000e+00 : f32
    %19 = vector.broadcast %cst_13 : f32 to vector<8x2xf32>
    %20 = vector.extract_strided_slice %16 {offsets = [0, 0], sizes = [8, 62], strides = [1, 1]} : vector<8x64xf32> to vector<8x62xf32>
    %21 = tpu.concatenate %19, %20 in 1 : vector<8x2xf32>, vector<8x62xf32> -> vector<8x64xf32>
    %22 = tpu.concatenate %21, %7, %16 in 0 : vector<8x64xf32>, vector<8x64xf32>, vector<8x64xf32> -> vector<24x64xf32>
    %cst_14 = arith.constant dense<0.000000e+00> : vector<16x64xf32>
    %23 = tpu.matmul %17, %22, %cst_14 {dimension_numbers = #tpu.dot_dimension_numbers<[1], [0], [0], [1], [0, 0, 1, 1], [], []>} : vector<16x24xf32>, vector<24x64xf32>, vector<16x64xf32> -> vector<16x64xf32>
    %24 = vector.broadcast %18 : vector<16x1xf32> to vector<16x64xf32>
    %25 = arith.addf %23, %24 : vector<16x64xf32>
    %cst_15 = arith.constant 0.000000e+00 : f32
    %26 = vector.broadcast %cst_15 : f32 to vector<16x64xf32>
    %27 = arith.maximumf %25, %26 : vector<16x64xf32>
    %c40 = arith.constant 40 : index
    %c0_16 = arith.constant 0 : index
    %28 = vector.load %arg1[%c40, %c0_16] : memref<98x64xf32, #tpu.memory_space<vmem>>, vector<16x8xf32>
    %c40_17 = arith.constant 40 : index
    %c0_18 = arith.constant 0 : index
    %29 = vector.load %arg2[%c40_17, %c0_18] : memref<98x1xf32, #tpu.memory_space<vmem>>, vector<16x1xf32>
    %cst_19 = arith.constant dense<0.000000e+00> : vector<16x64xf32>
    %30 = tpu.matmul %28, %7, %cst_19 {dimension_numbers = #tpu.dot_dimension_numbers<[1], [0], [0], [1], [0, 0, 1, 1], [], []>} : vector<16x8xf32>, vector<8x64xf32>, vector<16x64xf32> -> vector<16x64xf32>
    %31 = vector.broadcast %29 : vector<16x1xf32> to vector<16x64xf32>
    %32 = arith.addf %30, %31 : vector<16x64xf32>
    %c24 = arith.constant 24 : index
    %c0_20 = arith.constant 0 : index
    %33 = vector.load %arg1[%c24, %c0_20] : memref<98x64xf32, #tpu.memory_space<vmem>>, vector<16x48xf32>
    %c24_21 = arith.constant 24 : index
    %c0_22 = arith.constant 0 : index
    %34 = vector.load %arg2[%c24_21, %c0_22] : memref<98x1xf32, #tpu.memory_space<vmem>>, vector<16x1xf32>
    %cst_23 = arith.constant 0.000000e+00 : f32
    %35 = vector.broadcast %cst_23 : f32 to vector<16x2xf32>
    %36 = vector.extract_strided_slice %27 {offsets = [0, 0], sizes = [16, 62], strides = [1, 1]} : vector<16x64xf32> to vector<16x62xf32>
    %37 = tpu.concatenate %35, %36 in 1 : vector<16x2xf32>, vector<16x62xf32> -> vector<16x64xf32>
    %38 = vector.extract_strided_slice %27 {offsets = [0, 2], sizes = [16, 62], strides = [1, 1]} : vector<16x64xf32> to vector<16x62xf32>
    %cst_24 = arith.constant 0.000000e+00 : f32
    %39 = vector.broadcast %cst_24 : f32 to vector<16x2xf32>
    %40 = tpu.concatenate %38, %39 in 1 : vector<16x62xf32>, vector<16x2xf32> -> vector<16x64xf32>
    %41 = tpu.concatenate %37, %27, %40 in 0 : vector<16x64xf32>, vector<16x64xf32>, vector<16x64xf32> -> vector<48x64xf32>
    %cst_25 = arith.constant dense<0.000000e+00> : vector<16x64xf32>
    %42 = tpu.matmul %33, %41, %cst_25 {dimension_numbers = #tpu.dot_dimension_numbers<[1], [0], [0], [1], [0, 0, 1, 1], [], []>} : vector<16x48xf32>, vector<48x64xf32>, vector<16x64xf32> -> vector<16x64xf32>
    %43 = vector.broadcast %34 : vector<16x1xf32> to vector<16x64xf32>
    %44 = arith.addf %42, %43 : vector<16x64xf32>
    %45 = arith.addf %44, %32 : vector<16x64xf32>
    %cst_26 = arith.constant 0.000000e+00 : f32
    %46 = vector.broadcast %cst_26 : f32 to vector<16x64xf32>
    %47 = arith.maximumf %45, %46 : vector<16x64xf32>
    %c56 = arith.constant 56 : index
    %c0_27 = arith.constant 0 : index
    %48 = vector.load %arg1[%c56, %c0_27] : memref<98x64xf32, #tpu.memory_space<vmem>>, vector<16x48xf32>
    %c56_28 = arith.constant 56 : index
    %c0_29 = arith.constant 0 : index
    %49 = vector.load %arg2[%c56_28, %c0_29] : memref<98x1xf32, #tpu.memory_space<vmem>>, vector<16x1xf32>
    %cst_30 = arith.constant 0.000000e+00 : f32
    %50 = vector.broadcast %cst_30 : f32 to vector<16x2xf32>
    %51 = vector.extract_strided_slice %47 {offsets = [0, 0], sizes = [16, 62], strides = [1, 1]} : vector<16x64xf32> to vector<16x62xf32>
    %52 = tpu.concatenate %50, %51 in 1 : vector<16x2xf32>, vector<16x62xf32> -> vector<16x64xf32>
    %53 = vector.extract_strided_slice %47 {offsets = [0, 2], sizes = [16, 62], strides = [1, 1]} : vector<16x64xf32> to vector<16x62xf32>
    %cst_31 = arith.constant 0.000000e+00 : f32
    %54 = vector.broadcast %cst_31 : f32 to vector<16x2xf32>
    %55 = tpu.concatenate %53, %54 in 1 : vector<16x62xf32>, vector<16x2xf32> -> vector<16x64xf32>
    %56 = tpu.concatenate %52, %47, %55 in 0 : vector<16x64xf32>, vector<16x64xf32>, vector<16x64xf32> -> vector<48x64xf32>
    %cst_32 = arith.constant dense<0.000000e+00> : vector<16x64xf32>
    %57 = tpu.matmul %48, %56, %cst_32 {dimension_numbers = #tpu.dot_dimension_numbers<[1], [0], [0], [1], [0, 0, 1, 1], [], []>} : vector<16x48xf32>, vector<48x64xf32>, vector<16x64xf32> -> vector<16x64xf32>
    %58 = vector.broadcast %49 : vector<16x1xf32> to vector<16x64xf32>
    %59 = arith.addf %57, %58 : vector<16x64xf32>
    %cst_33 = arith.constant 0.000000e+00 : f32
    %60 = vector.broadcast %cst_33 : f32 to vector<16x64xf32>
    %61 = arith.maximumf %59, %60 : vector<16x64xf32>
    %c72 = arith.constant 72 : index
    %c0_34 = arith.constant 0 : index
    %62 = vector.load %arg1[%c72, %c0_34] : memref<98x64xf32, #tpu.memory_space<vmem>>, vector<16x48xf32>
    %c72_35 = arith.constant 72 : index
    %c0_36 = arith.constant 0 : index
    %63 = vector.load %arg2[%c72_35, %c0_36] : memref<98x1xf32, #tpu.memory_space<vmem>>, vector<16x1xf32>
    %cst_37 = arith.constant 0.000000e+00 : f32
    %64 = vector.broadcast %cst_37 : f32 to vector<16x2xf32>
    %65 = vector.extract_strided_slice %61 {offsets = [0, 0], sizes = [16, 62], strides = [1, 1]} : vector<16x64xf32> to vector<16x62xf32>
    %66 = tpu.concatenate %64, %65 in 1 : vector<16x2xf32>, vector<16x62xf32> -> vector<16x64xf32>
    %67 = vector.extract_strided_slice %61 {offsets = [0, 2], sizes = [16, 62], strides = [1, 1]} : vector<16x64xf32> to vector<16x62xf32>
    %cst_38 = arith.constant 0.000000e+00 : f32
    %68 = vector.broadcast %cst_38 : f32 to vector<16x2xf32>
    %69 = tpu.concatenate %67, %68 in 1 : vector<16x62xf32>, vector<16x2xf32> -> vector<16x64xf32>
    %70 = tpu.concatenate %66, %61, %69 in 0 : vector<16x64xf32>, vector<16x64xf32>, vector<16x64xf32> -> vector<48x64xf32>
    %cst_39 = arith.constant dense<0.000000e+00> : vector<16x64xf32>
    %71 = tpu.matmul %62, %70, %cst_39 {dimension_numbers = #tpu.dot_dimension_numbers<[1], [0], [0], [1], [0, 0, 1, 1], [], []>} : vector<16x48xf32>, vector<48x64xf32>, vector<16x64xf32> -> vector<16x64xf32>
    %72 = vector.broadcast %63 : vector<16x1xf32> to vector<16x64xf32>
    %73 = arith.addf %71, %72 : vector<16x64xf32>
    %74 = arith.addf %73, %47 : vector<16x64xf32>
    %cst_40 = arith.constant 0.000000e+00 : f32
    %75 = vector.broadcast %cst_40 : f32 to vector<16x64xf32>
    %76 = arith.maximumf %74, %75 : vector<16x64xf32>
    %77 = vector.extract_strided_slice %76 {offsets = [0, 2], sizes = [16, 62], strides = [1, 1]} : vector<16x64xf32> to vector<16x62xf32>
    %cst_41 = arith.constant 0xFF800000 : f32
    %78 = vector.broadcast %cst_41 : f32 to vector<16x2xf32>
    %79 = tpu.concatenate %77, %78 in 1 : vector<16x62xf32>, vector<16x2xf32> -> vector<16x64xf32>
    %80 = arith.maximumf %76, %79 : vector<16x64xf32>
    %81 = vector.extract_strided_slice %80 {offsets = [0, 4], sizes = [16, 60], strides = [1, 1]} : vector<16x64xf32> to vector<16x60xf32>
    %cst_42 = arith.constant 0xFF800000 : f32
    %82 = vector.broadcast %cst_42 : f32 to vector<16x4xf32>
    %83 = tpu.concatenate %81, %82 in 1 : vector<16x60xf32>, vector<16x4xf32> -> vector<16x64xf32>
    %84 = arith.maximumf %80, %83 : vector<16x64xf32>
    %85 = vector.extract_strided_slice %84 {offsets = [0, 8], sizes = [16, 56], strides = [1, 1]} : vector<16x64xf32> to vector<16x56xf32>
    %cst_43 = arith.constant 0xFF800000 : f32
    %86 = vector.broadcast %cst_43 : f32 to vector<16x8xf32>
    %87 = tpu.concatenate %85, %86 in 1 : vector<16x56xf32>, vector<16x8xf32> -> vector<16x64xf32>
    %88 = arith.maximumf %84, %87 : vector<16x64xf32>
    %89 = vector.extract_strided_slice %88 {offsets = [0, 0], sizes = [16, 2], strides = [1, 1]} : vector<16x64xf32> to vector<16x2xf32>
    %90 = vector.extract_strided_slice %88 {offsets = [0, 16], sizes = [16, 2], strides = [1, 1]} : vector<16x64xf32> to vector<16x2xf32>
    %91 = vector.extract_strided_slice %88 {offsets = [0, 32], sizes = [16, 2], strides = [1, 1]} : vector<16x64xf32> to vector<16x2xf32>
    %92 = vector.extract_strided_slice %88 {offsets = [0, 48], sizes = [16, 2], strides = [1, 1]} : vector<16x64xf32> to vector<16x2xf32>
    %93 = tpu.concatenate %89, %90, %91, %92 in 0 : vector<16x2xf32>, vector<16x2xf32>, vector<16x2xf32>, vector<16x2xf32> -> vector<64x2xf32>
    %c88 = arith.constant 88 : index
    %c0_44 = arith.constant 0 : index
    %94 = vector.load %arg1[%c88, %c0_44] : memref<98x64xf32, #tpu.memory_space<vmem>>, vector<10x64xf32>
    %c88_45 = arith.constant 88 : index
    %c0_46 = arith.constant 0 : index
    %95 = vector.load %arg2[%c88_45, %c0_46] : memref<98x1xf32, #tpu.memory_space<vmem>>, vector<10x1xf32>
    %cst_47 = arith.constant dense<0.000000e+00> : vector<10x2xf32>
    %96 = tpu.matmul %94, %93, %cst_47 {dimension_numbers = #tpu.dot_dimension_numbers<[1], [0], [0], [1], [0, 0, 1, 1], [], []>} : vector<10x64xf32>, vector<64x2xf32>, vector<10x2xf32> -> vector<10x2xf32>
    %97 = vector.broadcast %95 : vector<10x1xf32> to vector<10x2xf32>
    %98 = arith.addf %96, %97 : vector<10x2xf32>
    %cst_48 = arith.constant dense<0xFF800000> : vector<2xf32>
    %99 = vector.multi_reduction <maximumf>, %98, %cst_48 [0] : vector<10x2xf32> to vector<2xf32>
    %100 = vector.shape_cast %99 : vector<2xf32> to vector<1x2xf32>
    %101 = vector.broadcast %100 : vector<1x2xf32> to vector<10x2xf32>
    %102 = arith.subf %98, %101 : vector<10x2xf32>
    %103 = math.exp %102 : vector<10x2xf32>
    %cst_49 = arith.constant dense<0.000000e+00> : vector<2xf32>
    %104 = vector.multi_reduction <add>, %103, %cst_49 [0] : vector<10x2xf32> to vector<2xf32>
    %105 = vector.shape_cast %104 : vector<2xf32> to vector<1x2xf32>
    %106 = math.log %105 : vector<1x2xf32>
    %107 = vector.broadcast %106 : vector<1x2xf32> to vector<10x2xf32>
    %108 = arith.subf %102, %107 : vector<10x2xf32>
    %c0_50 = arith.constant 0 : index
    %c0_51 = arith.constant 0 : index
    %109 = vector.load %arg3[%c0_50, %c0_51] : memref<10x2xf32, #tpu.memory_space<vmem>>, vector<10x2xf32>
    tpu.vector_store %arg3[%c0_50, %c0_51], %108 {strides = array<i32>} : memref<10x2xf32, #tpu.memory_space<vmem>>, vector<10x2xf32>,
    return
  }
}

</mosaic_0001>

<bundles_post_ra>
// kernel: _lambda_.1
= control target key start
LH: loop header
LB: loop body
LE: loop exit
PB: predicated region body
PF: predicated region fallthrough
CT: control target
= control target key end

     0   :  { %v582_v3 = vmov 0   ;;  %vm23_vm0 = vcmask 130048   ;;  %vm71_vm1 = vcmask 506880   ;;  %vm81_vm2 = vcmask 15360   ;;  %s584_s9 = smov 126   ;;  %s585_s11 = smov 124   ;;  %s769_s0 = inlined_call_operand.vmem [shape: f32[32,64], index: 0, kind: input, shape index: {}]   ;;  %s770_s1 = inlined_call_operand.vmem [shape: f32[98,64], index: 1, kind: input, shape index: {}]   ;;  %s771_s2 = inlined_call_operand.vmem [shape: f32[98,1], index: 2, kind: input, shape index: {}]   ;;  %s772_s3 = inlined_call_operand.vmem [shape: f32[10,2], index: 3, kind: output, shape index: {}]  }
   0x1   :  { %v17_v0 = vld [vmem:[%s769_s0 + $0x8] sm:$0xff]  ;;  %v49_v1 = vld [vmem:[%s769_s0 + $0x18] sm:$0xff]  ;;  %v16_v2 = vld [vmem:[%s769_s0] sm:$0xff]  ;;  %543 = vset.pattern.permute.xlu0 %v582_v3  ;;  %544 = vset.pattern.permute.xlu1 %v582_v3  ;;  %vm93_vm4 = vcmask 195584   ;;  %vm139_vm5 = vcmask 64512   ;;  %vm201_vm6 = vcmask 392192  }
   0x2   :  { %41 = vmatpush.msra.mxu0 %v17_v0  ;;  %64 = vmatpush.msra.mxu1 %v49_v1  ;;  %v48_v4 = vld [vmem:[%s769_s0 + $0x10] sm:$0xff]  ;;  %v14_v5 = vld [vmem:[%s770_s1] sm:$0xff]  ;;  %s583_s0 = smov 2   ;;  %v75_v16 = vld [vmem:[%s771_s2 + $0x8] sm:$0xff]  ;;  %vm383_vm7 = vcmask 490496   ;;  %vm396_vm8 = vcmask 457728  }
   0x3   :  { %v15_v6 = vld [vmem:[%s771_s2] sm:$0xff]  ;;  %545 = vset.pattern.permute.xlu2 %v582_v3  ;;  %v76_v15 = vld [vmem:[%s771_s2 + $0x10] sm:$0xff]  ;;  %vm638_vm3 = vmneg %vm81_vm2  ;;  %s587_s12 = smov 112   ;;  %s588_s13 = smov 96   ;;  %vm435_vm9 = vcmask 523264   ;;  %vm466_vm10 = vcmask 9216  }
   0x4   :  { %20 = vperm.xlu0 %543, %v15_v6   ;;  %42 = vmatpush.msra.mxu0 %v16_v2  ;;  %v73_v18 = vld [vmem:[%s770_s1 + $0x8] sm:$0xff]  ;;  %v74_v20 = vld [vmem:[%s770_s1 + $0x10] sm:$0xff]  ;;  %v172_v31 = vld [vmem:[%s771_s2 + $0x20] sm:$0xff]  ;;  %s589_s14 = smov 80  }
   0x5   :  { %65 = vmatpush.msra.mxu1 %v48_v4  ;;  %500 = vmatmul.msk.f32.vlgmr.msra.gmra.mxu0 %vm23_vm0, %v14_v5  ;;  %v125_v21 = vld [vmem:[%s770_s1 + $0x28] sm:$0xff]  ;;  %v126_v32 = vld [vmem:[%s770_s1 + $0x30] sm:$0xff]  ;;  %v171_v36 = vld [vmem:[%s771_s2 + $0x18] sm:$0xff] }
   0x6   :  { %501 = vmatmul.msk.f32.vlgmr.msra.gmra.mxu1 %vm23_vm0, %v14_v5  ;;  %90 = vperm.xlu1 %544, %v76_v15   ;;  %v127_v30 = vld [vmem:[%s771_s2 + $0x28] sm:$0xff]  ;;  %v128_v34 = vld [vmem:[%s771_s2 + $0x30] sm:$0xff]  ;;  %v169_v38 = vld [vmem:[%s770_s1 + $0x18] sm:$0xff] }
   0x7   :  { %v170_v40 = vld [vmem:[%s770_s1 + $0x20] sm:$0xff]  ;;  %v237_v58 = vld [vmem:[%s771_s2 + $0x38] sm:$0xff] }
   0x8   :  { %v238_v57 = vld [vmem:[%s771_s2 + $0x40] sm:$0xff]  ;;  %v235_v62 = vld [vmem:[%s770_s1 + $0x38] sm:$0xff] }
   0x9   :  { %v236_v0 = vld [vmem:[%s770_s1 + $0x40] sm:$0xff] }
   0xe   :  { %85 = vperm.xlu1 %544, %v75_v16   ;;  %v299_v16 = vld [vmem:[%s770_s1 + $0x50] sm:$0xff] }
  0x76   :  { %v21_v7 = vpop.permute.xlu0 %20 }
  0x78   :  { %v91_v22 = vpop.permute.xlu1 %90 }
  0x80   :  { %v86_v23 = vpop.permute.xlu1 %85 }
  0x82   :  { %v44_v8 = vpop.f32.mrf.mxu0 }
  0x83   :  { %v67_v9 = vpop.f32.mrf.mxu1  ;;  %v45_v10 = vadd.f32 %v44_v8, %v21_v7 }
  0x84   :  { %v68_v11 = vadd.f32 %v67_v9, %v21_v7  ;;  %v301_v9 = vld [vmem:[%s771_s2 + $0x50] sm:$0xff] }
  0x85   :  { %v47_v12 = vmax.f32 %v45_v10, 0.0  ;;  %v300_v10 = vld [vmem:[%s771_s2 + $0x48] sm:$0xff] }
  0x86   :  { %v70_v13 = vmax.f32 %v68_v11, 0.0 }
  0x87   :  { %161 = vmatpush.msra.mxu3 %v47_v12 }
  0x88   :  { %502 = vmatpush.msk.msra.mxu2 %vm71_vm1, %v70_v13  ;;  %v72_v14 = vsel %vm71_vm1, %v70_v13, 0.0  ;;  %507 = vmatmul.msk.f32.vlgmr.msra.gmra.mxu3 %vm139_vm5, %v125_v21 }
  0x89   :  { %78 = vrot.lane.b32.xlu0 %v72_v14, %s583_s0  ;;  %v298_v14 = vld [vmem:[%s770_s1 + $0x48] sm:$0xff] }
  0x8a   :  { %114 = vmatpush.msra.mxu2 %v47_v12 }
  0x90   :  { %508 = vmatmul.msk.f32.gmra.mxu3 %vm139_vm5, %v126_v32 }
  0xfb   :  { %v79_v19 = vpop.permute.xlu0 %78 }
  0xfc   :  { %504 = vmatpush.msk.msra.mxu2 %vm638_vm3, %v79_v19 }
  0xfd   :  { %505 = vmatmul.msk.f32.vlgmr.msra.gmra.mxu2 %vm93_vm4, %v73_v18 }
 0x105   :  { %506 = vmatmul.msk.f32.gmra.mxu2 %vm93_vm4, %v74_v20 }
 0x10b   :  { %v163_v42 = vpop.f32.mrf.mxu3 }
 0x113   :  { %v166_v50 = vpop.f32.mrf.mxu3 }
 0x180   :  { %v117_v24 = vpop.f32.mrf.mxu2 }
 0x181   :  { %v118_v25 = vadd.f32 %v117_v24, %v86_v23 }
 0x183   :  { %v123_v26 = vmax.f32 %v118_v25, 0.0 }
 0x185   :  { %175 = vrot.lane.b32.xlu1 %v123_v26, %s583_s0 }
 0x188   :  { %v120_v27 = vpop.f32.mrf.mxu2 }
 0x189   :  { %v121_v28 = vadd.f32 %v120_v27, %v91_v22 }
 0x18b   :  { %v124_v29 = vmax.f32 %v121_v28, 0.0 }
 0x18d   :  { %177 = vrot.lane.b32.xlu0 %v124_v29, %s583_s0  ;;  %185 = vrot.lane.b32.xlu2 %v124_v29, %s584_s9 }
 0x18e   :  { %131 = vperm.xlu1 %544, %v127_v30  }
 0x195   :  { %198 = vperm.xlu0 %543, %v172_v31   ;;  %183 = vrot.lane.b32.xlu2 %v123_v26, %s584_s9 }
 0x19d   :  { %136 = vperm.xlu2 %545, %v128_v34  }
 0x1a5   :  { %193 = vperm.xlu2 %545, %v171_v36  }
 0x1e7   :  { %v186_v33 = vpop.permute.xlu2 %185 }
 0x1e8   :  { %509 = vmatpush.msk.msrb.mxu0 %vm71_vm1, %v186_v33 }
 0x1ef   :  { %v184_v35 = vpop.permute.xlu2 %183 }
 0x1f0   :  { %510 = vmatpush.msk.msrb.mxu0 %vm71_vm1, %v184_v35 }
 0x1f2   :  { %220 = vmatpush.msrb.mxu0 %v124_v29 }
 0x1f4   :  { %221 = vmatpush.msrb.mxu0 %v123_v26 }
 0x1f7   :  { %v176_v39 = vpop.permute.xlu1 %175  ;;  %v137_v41 = vpop.permute.xlu2 %136 }
 0x1f8   :  { %v167_v53 = vadd.f32 %v166_v50, %v137_v41 }
 0x1ff   :  { %v178_v37 = vpop.permute.xlu0 %177  ;;  %v194_v44 = vpop.permute.xlu2 %193 }
 0x200   :  { %512 = vmatpush.msk.msrb.mxu0 %vm638_vm3, %v178_v37  ;;  %v132_v43 = vpop.permute.xlu1 %131 }
 0x201   :  { %v164_v46 = vadd.f32 %v163_v42, %v132_v43 }
 0x202   :  { %514 = vmatpush.msk.msrb.mxu0 %vm638_vm3, %v176_v39 }
 0x203   :  { %515 = vmatmul.msk.f32.vlgmr.msrb.gmra.mxu0 %vm201_vm6, %v169_v38 }
 0x207   :  { %v199_v51 = vpop.permute.xlu0 %198 }
 0x20b   :  { %516 = vmatmul.msk.f32.gmra.mxu0 %vm201_vm6, %v170_v40 }
 0x280   :  { %v225_v45 = vpop.f32.mrf.mxu0 }
 0x281   :  { %v226_v47 = vadd.f32 %v225_v45, %v194_v44 }
 0x283   :  { %v231_v48 = vadd.f32 %v226_v47, %v164_v46 }
 0x285   :  { %v688_v49 = vmax.f32 %v231_v48, 0.0 }
 0x287   :  { %249 = vrot.lane.b32.xlu1 %v688_v49, %s584_s9 }
 0x288   :  { %v228_v52 = vpop.f32.mrf.mxu0 }
 0x289   :  { %v229_v54 = vadd.f32 %v228_v52, %v199_v51  ;;  %v424_v52 = vld [vmem:[%s771_s2 + $0x60] sm:$0x3] }
 0x28b   :  { %v232_v55 = vadd.f32 %v229_v54, %v167_v53  ;;  %v423_v53 = vld [vmem:[%s771_s2 + $0x58] sm:$0xff] }
 0x28d   :  { %v234_v56 = vmax.f32 %v232_v55, 0.0 }
 0x28f   :  { %243 = vrot.lane.b32.xlu2 %v234_v56, %s583_s0  ;;  %251 = vrot.lane.b32.xlu0 %v234_v56, %s584_s9 }
 0x290   :  { %264 = vperm.xlu1 %544, %v238_v57  }
 0x297   :  { %259 = vperm.xlu2 %545, %v237_v58   ;;  %241 = vrot.lane.b32.xlu0 %v688_v49, %s583_s0 }
 0x2e9   :  { %v244_v61 = vpop.permute.xlu2 %243 }
 0x2f1   :  { %v260_v1 = vpop.permute.xlu2 %259 }
 0x2f9   :  { %v250_v60 = vpop.permute.xlu1 %249 }
 0x301   :  { %v252_v59 = vpop.permute.xlu0 %251 }
 0x302   :  { %517 = vmatpush.msk.msrb.mxu1 %vm71_vm1, %v252_v59  ;;  %v265_v5 = vpop.permute.xlu1 %264 }
 0x304   :  { %518 = vmatpush.msk.msrb.mxu1 %vm71_vm1, %v250_v60 }
 0x306   :  { %285 = vmatpush.msrb.mxu1 %v234_v56 }
 0x308   :  { %286 = vmatpush.msrb.mxu1 %v688_v49 }
 0x309   :  { %v242_v63 = vpop.permute.xlu0 %241 }
 0x30a   :  { %520 = vmatpush.msk.msrb.mxu1 %vm638_vm3, %v244_v61 }
 0x30c   :  { %522 = vmatpush.msk.msrb.mxu1 %vm638_vm3, %v242_v63  ;;  %v421_v63 = vld [vmem:[%s770_s1 + $0x58] sm:$0xff] }
 0x30d   :  { %523 = vmatmul.msk.f32.vlgmr.msrb.gmra.mxu1 %vm201_vm6, %v235_v62 }
 0x315   :  { %524 = vmatmul.msk.f32.gmra.mxu1 %vm201_vm6, %v236_v0  ;;  %v422_v0 = vld [vmem:[%s770_s1 + $0x60] sm:$0x3] }
 0x38a   :  { %v290_v2 = vpop.f32.mrf.mxu1 }
 0x38b   :  { %v291_v3 = vadd.f32 %v290_v2, %v260_v1 }
 0x38d   :  { %v296_v4 = vmax.f32 %v291_v3, 0.0 }
 0x38f   :  { %312 = vrot.lane.b32.xlu1 %v296_v4, %s584_s9 }
 0x392   :  { %v293_v6 = vpop.f32.mrf.mxu1 }
 0x393   :  { %v294_v7 = vadd.f32 %v293_v6, %v265_v5 }
 0x395   :  { %v297_v8 = vmax.f32 %v294_v7, 0.0 }
 0x397   :  { %306 = vrot.lane.b32.xlu2 %v297_v8, %s583_s0  ;;  %314 = vrot.lane.b32.xlu0 %v297_v8, %s584_s9 }
 0x398   :  { %327 = vperm.xlu1 %544, %v301_v9  }
 0x39f   :  { %322 = vperm.xlu2 %545, %v300_v10   ;;  %304 = vrot.lane.b32.xlu0 %v296_v4, %s583_s0 }
 0x3f1   :  { %v307_v13 = vpop.permute.xlu2 %306 }
 0x3f9   :  { %v323_v19 = vpop.permute.xlu2 %322 }
 0x401   :  { %v313_v12 = vpop.permute.xlu1 %312 }
 0x409   :  { %v315_v11 = vpop.permute.xlu0 %314 }
 0x40a   :  { %525 = vmatpush.msk.msrb.mxu3 %vm71_vm1, %v315_v11  ;;  %v328_v21 = vpop.permute.xlu1 %327 }
 0x40c   :  { %526 = vmatpush.msk.msrb.mxu3 %vm71_vm1, %v313_v12 }
 0x40e   :  { %348 = vmatpush.msrb.mxu3 %v297_v8 }
 0x410   :  { %349 = vmatpush.msrb.mxu3 %v296_v4 }
 0x411   :  { %v305_v15 = vpop.permute.xlu0 %304 }
 0x412   :  { %528 = vmatpush.msk.msrb.mxu3 %vm638_vm3, %v307_v13 }
 0x414   :  { %530 = vmatpush.msk.msrb.mxu3 %vm638_vm3, %v305_v15 }
 0x415   :  { %531 = vmatmul.msk.f32.vlgmr.msrb.gmra.mxu3 %vm201_vm6, %v298_v14 }
 0x41d   :  { %532 = vmatmul.msk.f32.gmra.mxu3 %vm201_vm6, %v299_v16 }
 0x498   :  { %v353_v18 = vpop.f32.mrf.mxu3 }
 0x499   :  { %v354_v20 = vadd.f32 %v353_v18, %v323_v19 }
 0x49b   :  { %v359_v23 = vadd.f32 %v354_v20, %v688_v49 }
 0x49d   :  { %v361_v26 = vmax.f32 %v359_v23, 0.0 }
 0x4a0   :  { %v356_v22 = vpop.f32.mrf.mxu3 }
 0x4a1   :  { %v357_v24 = vadd.f32 %v356_v22, %v328_v21 }
 0x4a3   :  { %v360_v25 = vadd.f32 %v357_v24, %v234_v56 }
 0x4a5   :  { %v362_v17 = vmax.f32 %v360_v25, 0.0 }
 0x4a7   :  { %v546_v27 = vpack.i.bf16 %v361_v26, %v362_v17 }
 0x4a9   :  { %547 = vrot.lane.b32.xlu0 %v546_v27, %s584_s9  ;;  %s586_s9 = smov 120  }
 0x51b   :  { %v548_v28 = vpop.permute.xlu0 %547 }
 0x51c   :  { %v550_v29 = vunpack.i.h.bf16 %v548_v28  ;;  %v549_v30 = vunpack.i.l.bf16 %v548_v28 }
 0x51e   :  { %v371_v31 = vsel %vm71_vm1, %v550_v29, -inf  ;;  %v372_v32 = vsel %vm71_vm1, %v549_v30, -inf }
 0x51f   :  { %v373_v33 = vmax.f32 %v361_v26, %v371_v31  ;;  %v374_v34 = vmax.f32 %v362_v17, %v372_v32 }
 0x521   :  { %v551_v35 = vpack.i.bf16 %v373_v33, %v374_v34 }
 0x523   :  { %552 = vrot.lane.b32.xlu1 %v551_v35, %s585_s11 }
 0x595   :  { %v553_v36 = vpop.permute.xlu1 %552 }
 0x596   :  { %v555_v37 = vunpack.i.h.bf16 %v553_v36  ;;  %v554_v38 = vunpack.i.l.bf16 %v553_v36 }
 0x598   :  { %v384_v39 = vsel %vm383_vm7, %v555_v37, -inf  ;;  %v385_v40 = vsel %vm383_vm7, %v554_v38, -inf }
 0x599   :  { %v386_v41 = vmax.f32 %v373_v33, %v384_v39  ;;  %v387_v42 = vmax.f32 %v374_v34, %v385_v40 }
 0x59b   :  { %v556_v43 = vpack.i.bf16 %v386_v41, %v387_v42 }
 0x59d   :  { %557 = vrot.lane.b32.xlu2 %v556_v43, %s586_s9 }
 0x5f7   :  { %v558_v44 = vpop.permute.xlu2 %557 }
 0x5f8   :  { %v560_v45 = vunpack.i.h.bf16 %v558_v44  ;;  %v559_v46 = vunpack.i.l.bf16 %v558_v44 }
 0x5fa   :  { %v397_v47 = vsel %vm396_vm8, %v560_v45, -inf  ;;  %v398_v48 = vsel %vm396_vm8, %v559_v46, -inf }
 0x5fb   :  { %v399_v49 = vmax.f32 %v386_v41, %v397_v47  ;;  %v400_v50 = vmax.f32 %v387_v42, %v398_v48 }
 0x5fd   :  { %v571_v51 = vpack.i.bf16 %v399_v49, %v400_v50 }
 0x5ff   :  { %572 = vrot.lane.b32.xlu2 %v571_v51, %s587_s12  ;;  %567 = vrot.lane.b32.xlu1 %v571_v51, %s588_s13 }
 0x600   :  { %562 = vrot.lane.b32.xlu0 %v571_v51, %s589_s14 }
 0x607   :  { %432 = vperm.xlu1 %544, %v424_v52  }
 0x608   :  { %427 = vperm.xlu0 %543, %v423_v53  }
 0x659   :  { %v573_v59 = vpop.permute.xlu2 %572 }
 0x65a   :  { %v574_v61 = vunpack.i.l.bf16 %v573_v59  ;;  %v575_v62 = vunpack.i.h.bf16 %v573_v59 }
 0x671   :  { %v568_v56 = vpop.permute.xlu1 %567 }
 0x672   :  { %v563_v54 = vpop.permute.xlu0 %562  ;;  %v569_v58 = vunpack.i.l.bf16 %v568_v56  ;;  %v570_v60 = vunpack.i.h.bf16 %v568_v56 }
 0x673   :  { %v564_v55 = vunpack.i.l.bf16 %v563_v54  ;;  %v565_v57 = vunpack.i.h.bf16 %v563_v54 }
 0x675   :  { %450 = vmatpush.msrb.mxu2 %v564_v55 }
 0x677   :  { %451 = vmatpush.msrb.mxu2 %v565_v57 }
 0x679   :  { %452 = vmatpush.msrb.mxu2 %v569_v58  ;;  %v433_v4 = vpop.permute.xlu1 %432 }
 0x67a   :  { %v428_v2 = vpop.permute.xlu0 %427 }
 0x67b   :  { %453 = vmatpush.msrb.mxu2 %v570_v60 }
 0x67d   :  { %454 = vmatpush.msrb.mxu2 %v574_v61 }
 0x67f   :  { %455 = vmatpush.msrb.mxu2 %v575_v62 }
 0x681   :  { %456 = vmatpush.msrb.mxu2 %v400_v50 }
 0x683   :  { %457 = vmatpush.msrb.mxu2 %v399_v49 }
 0x684   :  { %533 = vmatmul.msk.f32.vlgmr.msrb.gmra.mxu2 %vm435_vm9, %v421_v63 }
 0x68c   :  { %534 = vmatmul.msk.f32.gmra.mxu2 %vm435_vm9, %v422_v0 }
 0x707   :  { %v459_v1 = vpop.f32.mrf.mxu2 }
 0x708   :  { %v460_v3 = vadd.f32 %v459_v1, %v428_v2 }
 0x70a   :  { %v465_v7 = vsel %vm81_vm2, %v460_v3, -inf }
 0x70f   :  { %v462_v5 = vpop.f32.mrf.mxu2 }
 0x710   :  { %v463_v6 = vadd.f32 %v462_v5, %v433_v4 }
 0x712   :  { %v467_v8 = vsel %vm466_vm10, %v463_v6, -inf }
 0x713   :  { %v468_v9 = vmax.f32 %v465_v7, %v467_v8 }
 0x715   :  { %v469_v10 = vrot.slane %v468_v9, 4 }
 0x717   :  { %v470_v11 = vmax.f32 %v468_v9, %v469_v10 }
 0x719   :  { %v471_v12 = vrot.slane %v470_v11, 2 }
 0x71b   :  { %v472_v13 = vmax.f32 %v470_v11, %v471_v12 }
 0x71d   :  { %v473_v14 = vrot.slane %v472_v13, 1 }
 0x71f   :  { %v474_v15 = vmax.f32 %v472_v13, %v473_v14 }
 0x721   :  { %v475_v16 = vsub.f32 %v460_v3, %v474_v15  ;;  %v476_v18 = vsub.f32 %v463_v6, %v474_v15 }
 0x723   :  { %v477_v19 = vmul.f32 1.442695, %v475_v16  ;;  %v479_v20 = vmul.f32 1.442695, %v476_v18 }
 0x725   :  { %576 = vpow2.f32 %v477_v19 }
 0x726   :  { %578 = vpow2.f32 %v479_v20 }
 0x72b   :  { %v577_v21 = vpop.eup %576 }
 0x72c   :  { %v579_v22 = vpop.eup %578  ;;  %v481_v23 = vsel %vm81_vm2, %v577_v21, 0.0 }
 0x72d   :  { %v482_v24 = vsel %vm466_vm10, %v579_v22, 0.0 }
 0x72e   :  { %v483_v25 = vadd.f32 %v482_v24, %v481_v23 }
 0x730   :  { %v484_v26 = vrot.slane %v483_v25, 4 }
 0x732   :  { %v485_v17 = vadd.f32 %v484_v26, %v483_v25 }
 0x734   :  { %v486_v27 = vrot.slane %v485_v17, 2 }
 0x736   :  { %v487_v28 = vadd.f32 %v486_v27, %v485_v17 }
 0x738   :  { %v488_v29 = vrot.slane %v487_v28, 1 }
 0x73a   :  { %v489_v30 = vadd.f32 %v488_v29, %v487_v28 }
 0x73c   :  { %580 = vlog2.f32 %v489_v30 }
 0x742   :  { %v581_v31 = vpop.eup %580 }
 0x743   :  { %v491_v32 = vmul.f32 0.6931472, %v581_v31 }
 0x745   :  { %v492_v33 = vsub.f32 %v475_v16, %v491_v32  ;;  %v493_v34 = vsub.f32 %v476_v18, %v491_v32 }
 0x747   :  { %494 = vst.msk [vmem:[%s772_s3] sm:$0xff] %vm81_vm2, %v492_v33 }
 0x748   :  { %495 = vst.msk [vmem:[%s772_s3 + $0x8] sm:$0x3] %vm466_vm10, %v493_v34 }

</bundles_post_ra>
